<compile_context>
chip_gen: v7x
topology: tpu7x:2x2x1
jax: 0.10.0
libtpu: 0.0.40
codegen_flags: <defaults>
</compile_context>

<pallas_src>
import math
import functools

import jax
import jax.numpy as jnp
from jax.experimental import pallas as pl
from jax.experimental.pallas import tpu as pltpu


MAX_TILE_ROWS = 2048                 # rows per grid step (v6e: bigger tiles, fewer
                                     # ~0.35us steps, longer contiguous DMAs)
SUBLANE_MULT = 16                    # bf16-friendly sublane multiple for row tiles
VMEM_LIMIT_BYTES = 32 * 1024 * 1024  # explicit scoped-VMEM budget; per-step footprint
                                     # here is < 6 MiB double-buffered (safe on v5e/
                                     # v6e/v7x, incl. v7x's 64 MiB physical VMEM)


def _round_up(x, m):
    return (x + m - 1) // m * m


def _pick_tile(rows, max_tile=MAX_TILE_ROWS, mult=SUBLANE_MULT):
    """Row-tile selection: prefer an exact divisor of `rows` (no pad + slice
    round trips), a multiple of 16 (bf16 sublanes), <= max_tile, and >= 2 grid
    steps so both v7x TensorCores get work.  Falls back to a single
    full-extent block (always legal); only pads for pathological row counts."""
    if rows < 2 * mult:
        return rows, rows                      # tiny: single full-extent block
    cap = min(max_tile, rows // 2)
    cap -= cap % mult
    t = cap
    while t >= mult:                           # exact divisor => no padding
        if rows % t == 0:
            return t, rows
        t -= mult
    if rows <= max_tile:
        return rows, rows                      # no nice divisor: one full block
    t = max(cap, mult)                         # rare pad path (not hit in practice)
    return t, _round_up(rows, t)


# ----------------------------------------------------------------------------
# Kernel 1: row-tiled, lane-packed (im2col-rows @ W) + bias + SiLU
#           (= Conv2d + BN + SiLU)
# ----------------------------------------------------------------------------
def _mm_bias_silu_kernel(x_ref, w_ref, b_ref, o_ref):
    acc = jnp.dot(x_ref[...], w_ref[...], preferred_element_type=jnp.float32)
    acc = acc + b_ref[...]
    o_ref[...] = (acc * jax.nn.sigmoid(acc)).astype(o_ref.dtype)


def matmul_bias_silu(x, w, b, *, out_dtype=jnp.bfloat16):
    """SiLU(x @ w + b) with a lane-dense (128-wide) output.

    x:(R,K) bf16 rows, w:(K,C) f32, b:(C,) f32.  g = 128//C consecutive rows
    are packed into one 128-lane output row: the (R,K)->(R/g, g*K) and
    (R/g, g*C)->(R,C) reshapes are row-major contiguity-preserving (free in
    XLA) and the weight becomes block-diagonal kron(I_g, w), so the kernel
    issues full unmasked 128-lane stores with no in-kernel relayout.
    Accumulate/activate in f32, store `out_dtype` (bf16 intermediates).
    """
    R, K = x.shape
    C = w.shape[1]
    g = 128 // C if 128 % C == 0 else 1
    while g > 1 and (R % g != 0 or R // g < 8):
        g //= 2
    Kp, Cp, Rp = g * K, g * C, R // g

    xp = x.reshape(Rp, Kp).astype(jnp.bfloat16)             # free reshape
    wbd = jnp.kron(jnp.eye(g, dtype=w.dtype), w).astype(jnp.bfloat16)
    bp = jnp.tile(b.reshape(1, C), (1, g)).astype(jnp.float32)

    tile_r, Rpad = _pick_tile(Rp)
    if Rpad != Rp:
        xp = jnp.pad(xp, ((0, Rpad - Rp), (0, 0)))

    out = pl.pallas_call(
        _mm_bias_silu_kernel,
        out_shape=jax.ShapeDtypeStruct((Rpad, Cp), out_dtype),
        grid=(Rpad // tile_r,),
        in_specs=[
            pl.BlockSpec((tile_r, Kp), lambda i: (i, 0)),
            pl.BlockSpec((Kp, Cp), lambda i: (0, 0)),
            pl.BlockSpec((1, Cp), lambda i: (0, 0)),
        ],
        out_specs=pl.BlockSpec((tile_r, Cp), lambda i: (i, 0)),
        compiler_params=pltpu.CompilerParams(
            dimension_semantics=("parallel",),
            vmem_limit_bytes=VMEM_LIMIT_BYTES),
        cost_estimate=pl.CostEstimate(
            flops=int(2 * Rpad * Kp * Cp),
            transcendentals=int(Rpad * Cp),
            bytes_accessed=int(Rpad * Kp * 2 + Kp * Cp * 2 + Rpad * Cp * 2)),
    )(xp, wbd, bp)
    if Rpad != Rp:
        out = out[:Rp]
    return out.reshape(R, C)                                 # free reshape back


# ----------------------------------------------------------------------------
# Kernel 2: fused Detect head (1x1 conv as matmul) + eval-mode decode.
# Grid values AND the per-column selector are generated in-kernel; anchors are
# a single tiny (1, na*no) row (no (R, no) grid / anchor_grid HBM tensors).
# ----------------------------------------------------------------------------
def _head_decode_kernel(x_ref, w_ref, b_ref, a_ref, raw_ref, dec_ref,
                        *, nx, ny, stride, no, tile_r):
    # 1x1 conv == matmul over NHWC rows
    t = jnp.dot(x_ref[...], w_ref[...], preferred_element_type=jnp.float32)
    t = t + b_ref[...]
    raw_ref[...] = t.astype(raw_ref.dtype)

    # Global row -> (y, x) spatial coordinates.  Rows are (n, y, x) ordered:
    #   x = row mod nx,  y = (row // nx) mod ny.
    # f32 floor-division is exact for the row counts asserted in the wrapper
    # (R <= 2^22); the +0.25/n eps guards exact multiples against rounding.
    r0 = pl.program_id(0) * tile_r
    row = (r0 + jax.lax.broadcasted_iota(jnp.int32, t.shape, 0)).astype(jnp.float32)
    q = jnp.floor(row / nx + 0.25 / nx)          # row // nx = n*ny + y
    gx = row - q * nx - 0.5                      # (row % nx) - 0.5
    q2 = jnp.floor(q / ny + 0.25 / ny)           # q // ny = n
    gy = q - q2 * ny - 0.5                       # (q % ny) - 0.5

    # Column selector j = lane % no, generated in-kernel (values < 32, exact).
    lane = jax.lax.broadcasted_iota(jnp.int32, t.shape, 1).astype(jnp.float32)
    jf = lane - jnp.floor(lane / no + 0.25 / no) * no

    anc = a_ref[...]     # (1, na*no): anchor w/h (pixels) at j==2/3, else 1.0
    s = jax.nn.sigmoid(t)
    xy = (s * 2.0 + jnp.where(jf < 1.0, gx, gy)) * stride
    wh = (s * 2.0) ** 2 * anc
    dec_ref[...] = jnp.where(jf < 2.0, xy,
                             jnp.where(jf < 4.0, wh, s)).astype(dec_ref.dtype)


def head_decode(x, w, b, arow, *, nx, ny, stride, no):
    """Fused Detect 1x1 conv + decode.  x:(R,C1) bf16 rows.
    Returns (raw, decoded), each (R, na*no) f32."""
    R, C1 = x.shape
    C = w.shape[1]
    # f32 row->(y,x) decode is exact only for small global row indices.
    # TODO(synk): switch to per-tile integer index decomposition for R > 2^22.
    assert R <= (1 << 22), "row->grid f32 decode requires R <= 2^22"
    tile_r, Rpad = _pick_tile(R)
    xb = x.astype(jnp.bfloat16)
    wb = w.astype(jnp.bfloat16)
    if Rpad != R:
        xb = jnp.pad(xb, ((0, Rpad - R), (0, 0)))
    kern = functools.partial(_head_decode_kernel, nx=int(nx), ny=int(ny),
                             stride=float(stride), no=int(no), tile_r=tile_r)
    raw, dec = pl.pallas_call(
        kern,
        out_shape=(jax.ShapeDtypeStruct((Rpad, C), jnp.float32),
                   jax.ShapeDtypeStruct((Rpad, C), jnp.float32)),
        grid=(Rpad // tile_r,),
        in_specs=[
            pl.BlockSpec((tile_r, C1), lambda i: (i, 0)),
            pl.BlockSpec((C1, C), lambda i: (0, 0)),
            pl.BlockSpec((1, C), lambda i: (0, 0)),
            pl.BlockSpec((1, C), lambda i: (0, 0)),
        ],
        out_specs=(pl.BlockSpec((tile_r, C), lambda i: (i, 0)),
                   pl.BlockSpec((tile_r, C), lambda i: (i, 0))),
        compiler_params=pltpu.CompilerParams(
            dimension_semantics=("parallel",),
            vmem_limit_bytes=VMEM_LIMIT_BYTES),
        cost_estimate=pl.CostEstimate(
            flops=int(2 * Rpad * C1 * C),
            transcendentals=int(Rpad * C),
            bytes_accessed=int(Rpad * C1 * 2 + C1 * C * 2 + 2 * Rpad * C * 4)),
    )(xb, wb, b.reshape(1, C), arow)
    if Rpad != R:
        raw, dec = raw[:R], dec[:R]
    return raw, dec


# ----------------------------------------------------------------------------
# JAX glue: NHWC im2col (bf16), Conv(+BN+SiLU), Detect head
# ----------------------------------------------------------------------------
def _fold_bn(w, bn):
    """Fold BatchNorm2d(eval) into Conv2d weights (PyTorch OIHW layout)."""
    gamma, beta, mean, var, eps = bn
    scale = gamma / jnp.sqrt(var + eps)
    return w * scale[:, None, None, None], beta - mean * scale


def im2col_nhwc(x, k, s, p):
    """x: NHWC -> (N*OH*OW, k*k*C) patches, row order (n, oy, ox), col (tap, c)."""
    N, H, W, C = x.shape
    xp = jnp.pad(x, ((0, 0), (p, p), (p, p), (0, 0)))
    OH = (H + 2 * p - k) // s + 1
    OW = (W + 2 * p - k) // s + 1
    cols = []
    for di in range(k):
        for dj in range(k):
            cols.append(xp[:, di:di + s * OH:s, dj:dj + s * OW:s, :])  # (N,OH,OW,C)
    cols = jnp.concatenate(cols, axis=-1)          # (N, OH, OW, k*k*C)
    return cols.reshape(N * OH * OW, k * k * C), OH, OW


def conv_bn_silu(x_nhwc, w, bn, k=3, s=2, p=1):
    """Conv2d(bias=False)+BN(eval)+SiLU on an NHWC activation; returns bf16 NHWC."""
    # TODO(synk): fuse im2col into the kernel (manual halo DMA from HBM); the
    # stride-2 halo slab is not expressible with Blocked BlockSpecs.  The bf16
    # cols below already cut the previous f32-cols + cast traffic ~3x.
    w_f, b_f = _fold_bn(w, bn)
    C2 = w.shape[0]
    N = x_nhwc.shape[0]
    cols, OH, OW = im2col_nhwc(x_nhwc.astype(jnp.bfloat16), k, s, p)  # bf16 cols
    # weight matrix rows ordered (tap, c) to match im2col columns
    wmat = w_f.transpose(2, 3, 1, 0).reshape(-1, C2)
    out = matmul_bias_silu(cols, wmat, b_f)         # (N*OH*OW, C2) bf16
    return out.reshape(N, OH, OW, C2)               # stay NHWC, bf16


def detect_forward(feats_nhwc, head_w, head_b, anchors_px, strides, na, nc):
    """Detect.forward in eval mode (training=False, export=False)."""
    no = nc + 5
    z, xs = [], []
    for i, f in enumerate(feats_nhwc):
        N, ny, nx, C1 = f.shape
        rows = f.reshape(N * ny * nx, C1)                       # bf16 NHWC rows
        wmat = head_w[i].reshape(na * no, C1).T                 # (C1, na*no)
        arow = jnp.ones((na, no), jnp.float32).at[:, 2:4].set(
            anchors_px[i]).reshape(1, na * no)
        raw, dec = head_decode(rows, wmat, head_b[i], arow,
                               nx=nx, ny=ny, stride=strides[i], no=no)
        # (bs, na*no, ny, nx).view(bs,na,no,ny,nx).permute(0,1,3,4,2) equivalent:
        xi = raw.reshape(N, ny, nx, na, no).transpose(0, 3, 1, 2, 4)
        xs.append(xi)
        z.append(dec.reshape(N, ny, nx, na, no).transpose(0, 3, 1, 2, 4)
                    .reshape(N, na * ny * nx, no))
    return jnp.concatenate(z, axis=1), xs


# ----------------------------------------------------------------------------
# DetectionModel: parameters + forward
# ----------------------------------------------------------------------------
def init_params(key, nc=4, na=3):
    chans = [3, 8, 16, 32]
    no = nc + 5
    strides = [2.0, 4.0, 8.0]
    anchors_px = jnp.array(
        [[[4., 5.], [6., 8.], [10., 12.]],
         [[16., 20.], [24., 30.], [33., 40.]],
         [[50., 60.], [80., 90.], [120., 140.]]], jnp.float32)   # ascending w/ stride

    params = {"convs": [], "head_w": [], "head_b": []}
    keys = jax.random.split(key, 8)
    # backbone convs: Conv2d(c1,c2,3,2,1,bias=False) + BN defaults
    for li in range(3):
        c1, c2 = chans[li], chans[li + 1]
        w = jax.random.normal(keys[li], (c2, c1, 3, 3), jnp.float32) * 0.1
        bn = (jnp.ones((c2,), jnp.float32),    # gamma
              jnp.zeros((c2,), jnp.float32),   # beta
              jnp.zeros((c2,), jnp.float32),   # running_mean
              jnp.ones((c2,), jnp.float32),    # running_var
              1e-3)                            # eps
        params["convs"].append((w, bn))
    # Detect 1x1 convs + _initialize_biases()
    for li in range(3):
        c1 = chans[li + 1]
        w = jax.random.normal(keys[3 + li], (na * no, c1, 1, 1), jnp.float32) * 0.1
        b = jax.random.normal(keys[6], (na * no,), jnp.float32) * 0.01
        b = b.reshape(na, no)
        b = b.at[:, 4].add(math.log(8.0 / (640.0 / strides[li]) ** 2))
        b = b.at[:, 5:5 + nc].add(math.log(0.6 / (nc - 0.99999)))
        params["head_w"].append(w)
        params["head_b"].append(b.reshape(-1))
    params["anchors_px"] = anchors_px
    params["strides"] = strides
    params["nc"], params["na"] = nc, na
    return params


def detection_model_forward(params, x_nchw):
    """BaseModel._forward_once over [Conv, Conv, Conv, Detect], eval mode."""
    x = jnp.transpose(x_nchw, (0, 2, 3, 1))       # single NCHW -> NHWC at entry
    feats = []
    for (w, bn) in params["convs"]:
        x = conv_bn_silu(x, w, bn, k=3, s=2, p=1)  # bf16 NHWC intermediates
        feats.append(x)
    return detect_forward(feats, params["head_w"], params["head_b"],
                          params["anchors_px"], params["strides"],
                          params["na"], params["nc"])


# ----------------------------------------------------------------------------
# Pure-JAX reference (no Pallas).  Uses the same bf16-input / f32-accumulate
# quantization (cast at each layer input) so the comparison isolates kernel
# correctness.
# ----------------------------------------------------------------------------
def _ref_forward(params, x):
    def conv_ref(x, w, bn, stride):
        w_f, b_f = _fold_bn(w, bn)
        y = jax.lax.conv_general_dilated(
            x.astype(jnp.bfloat16), w_f.astype(jnp.bfloat16),
            (stride, stride), ((1, 1), (1, 1)),
            dimension_numbers=("NCHW", "OIHW", "NCHW"),
            preferred_element_type=jnp.float32)
        y = y + b_f[None, :, None, None]
        return y * jax.nn.sigmoid(y)

    feats = []
    for (w, bn) in params["convs"]:
        x = conv_ref(x, w, bn, 2)
        feats.append(x)

    nc, na = params["nc"], params["na"]
    no = nc + 5
    z, xs = [], []
    for i, f in enumerate(feats):
        w, b = params["head_w"][i], params["head_b"][i]
        y = jax.lax.conv_general_dilated(
            f.astype(jnp.bfloat16), w.astype(jnp.bfloat16),
            (1, 1), ((0, 0), (0, 0)),
            dimension_numbers=("NCHW", "OIHW", "NCHW"),
            preferred_element_type=jnp.float32)
        y = y + b[None, :, None, None]
        N, _, ny, nx = y.shape
        xi = y.reshape(N, na, no, ny, nx).transpose(0, 1, 3, 4, 2)
        xs.append(xi)
        yv, xv = jnp.meshgrid(jnp.arange(ny, dtype=jnp.float32),
                              jnp.arange(nx, dtype=jnp.float32), indexing="ij")
        grid = jnp.stack((xv, yv), -1)[None, None] - 0.5
        ag = params["anchors_px"][i][None, :, None, None, :]
        s = jax.nn.sigmoid(xi)
        xy = (s[..., :2] * 2 + grid) * params["strides"][i]
        wh = (s[..., 2:4] * 2) ** 2 * ag
        out = jnp.concatenate([xy, wh, s[..., 4:]], -1)
        z.append(out.reshape(N, na * ny * nx, no))
    return jnp.concatenate(z, 1), xs


# ----------------------------------------------------------------------------
if __name__ == "__main__":
    key = jax.random.PRNGKey(0)
    kp, kx = jax.random.split(key)
    params = init_params(kp, nc=4, na=3)

    x = jax.random.normal(kx, (2, 3, 16, 16), jnp.float32)   # NCHW, like PyTorch

    z, feats = detection_model_forward(params, x)
    z = jax.block_until_ready(z)
    feats = [jax.block_until_ready(f) for f in feats]

    # sanity check vs pure-JAX reference
    z_ref, feats_ref = _ref_forward(params, x)
    assert z.shape == (2, 3 * (64 + 16 + 4), 9), z.shape
    assert all(a.shape == b.shape for a, b in zip(feats, feats_ref))
    assert jnp.allclose(z, z_ref, rtol=1e-3, atol=1e-3), "detect output mismatch"
    for a, b in zip(feats, feats_ref):
        assert jnp.allclose(a, b, rtol=1e-3, atol=1e-3), "feature map mismatch"

    print("KERNEL_OK")
</pallas_src>

<mosaic_0001>
module attributes {stable_mosaic.version = 11 : i64} {
  func.func @_mm_bias_silu_kernel(%arg0: i32, %arg1: memref<8x432xbf16, #tpu.memory_space<vmem>>, %arg2: memref<432x128xbf16, #tpu.memory_space<vmem>>, %arg3: memref<1x128xf32, #tpu.memory_space<vmem>>, %arg4: memref<8x128xbf16, #tpu.memory_space<vmem>>) attributes {dimension_semantics = [#tpu.dimension_semantics<parallel>], iteration_bounds = array<i64: 1>, scalar_prefetch = 0 : i64, scratch_operands = 0 : i64, tpu.core_type = #tpu.core_type<tc>, window_params = [{transform_indices = @transform_0, window_bounds = array<i64: 8, 432>}, {pipeline_mode = #tpu.pipeline_mode<synchronous>, transform_indices = @transform_1, window_bounds = array<i64: 432, 128>}, {pipeline_mode = #tpu.pipeline_mode<synchronous>, transform_indices = @transform_2, window_bounds = array<i64: 1, 128>}, {transform_indices = @transform_3, window_bounds = array<i64: 8, 128>}]} {
    %c0 = arith.constant 0 : index
    %c0_0 = arith.constant 0 : index
    %0 = vector.load %arg1[%c0, %c0_0] : memref<8x432xbf16, #tpu.memory_space<vmem>>, vector<8x432xbf16>
    %c0_1 = arith.constant 0 : index
    %c0_2 = arith.constant 0 : index
    %1 = vector.load %arg2[%c0_1, %c0_2] : memref<432x128xbf16, #tpu.memory_space<vmem>>, vector<432x128xbf16>
    %cst = arith.constant dense<0.000000e+00> : vector<8x128xf32>
    %2 = tpu.matmul %0, %1, %cst {dimension_numbers = #tpu.dot_dimension_numbers<[1], [0], [0], [1], [0, 0, 1, 1], [], []>} : vector<8x432xbf16>, vector<432x128xbf16>, vector<8x128xf32> -> vector<8x128xf32>
    %c0_3 = arith.constant 0 : index
    %c0_4 = arith.constant 0 : index
    %3 = vector.load %arg3[%c0_3, %c0_4] : memref<1x128xf32, #tpu.memory_space<vmem>>, vector<1x128xf32>
    %4 = vector.broadcast %3 : vector<1x128xf32> to vector<8x128xf32>
    %5 = arith.addf %2, %4 : vector<8x128xf32>
    %6 = arith.negf %5 : vector<8x128xf32>
    %7 = math.exp %6 : vector<8x128xf32>
    %cst_5 = arith.constant 1.000000e+00 : f32
    %8 = vector.broadcast %cst_5 : f32 to vector<8x128xf32>
    %9 = arith.addf %8, %7 : vector<8x128xf32>
    %10 = arith.divf %8, %9 : vector<8x128xf32>
    %11 = arith.mulf %5, %10 : vector<8x128xf32>
    %12 = arith.truncf %11 : vector<8x128xf32> to vector<8x128xbf16>
    %c0_6 = arith.constant 0 : index
    %c0_7 = arith.constant 0 : index
    %13 = vector.load %arg4[%c0_6, %c0_7] : memref<8x128xbf16, #tpu.memory_space<vmem>>, vector<8x128xbf16>
    tpu.vector_store %arg4[%c0_6, %c0_7], %12 {strides = array<i32>} : memref<8x128xbf16, #tpu.memory_space<vmem>>, vector<8x128xbf16>,
    return
  }
  func.func @transform_0(%arg0: i32) -> (i32, i32) {
    %c0_i32 = arith.constant 0 : i32
    %c0_i32_0 = arith.constant 0 : i32
    return %arg0, %c0_i32 : i32, i32
  }
  func.func @transform_1(%arg0: i32) -> (i32, i32) {
    %c0_i32 = arith.constant 0 : i32
    %c0_i32_0 = arith.constant 0 : i32
    %c0_i32_1 = arith.constant 0 : i32
    return %c0_i32, %c0_i32_0 : i32, i32
  }
  func.func @transform_2(%arg0: i32) -> (i32, i32) {
    %c0_i32 = arith.constant 0 : i32
    %c0_i32_0 = arith.constant 0 : i32
    %c0_i32_1 = arith.constant 0 : i32
    return %c0_i32, %c0_i32_0 : i32, i32
  }
  func.func @transform_3(%arg0: i32) -> (i32, i32) {
    %c0_i32 = arith.constant 0 : i32
    %c0_i32_0 = arith.constant 0 : i32
    return %arg0, %c0_i32 : i32, i32
  }
}

</mosaic_0001>

<bundles_post_ra>
// kernel: tpu_custom_call.1
= control target key start
LH: loop header
LB: loop body
LE: loop exit
PB: predicated region body
PF: predicated region fallthrough
CT: control target
= control target key end

     0   :  { %8 = vsyncpa [#allocation3], 0  ;;  %s641_s0 = inlined_call_operand.hbm [shape: bf16[8,432], index: 0, kind: input, shape index: {}]   ;;  %s642_s1 = inlined_call_operand.hbm [shape: bf16[432,128], index: 1, kind: input, shape index: {}]   ;;  %s643_s2 = inlined_call_operand.vmem [shape: f32[1,128], index: 2, kind: input, shape index: {}]   ;;  %s644_s3 = inlined_call_operand.hbm [shape: bf16[8,128], index: 3, kind: output, shape index: {}]  }
   0x1   :  { %9 = vsyncpa [#allocation6], 0 }
   0x2   :  { %10 = vsyncpa [#allocation4], 0  ;;  %s558_s12 = smov [#allocation2]   ;;  %s559_s14 = smov [#allocation5]  }
   0x3   :  { %s17_s13 = sshll.u32 %s558_s12, 4  ;;  %s26_s15 = sshll.u32 %s559_s14, 4  ;;  %s18_s13 = int_to_ptr.vmem [resolvable:$true] %s17_s13  ;;  %s584_s15 = int_to_ptr.vmem [resolvable:$true] %s26_s15 }
   0x4   :  { %s486_s18 = scalar_lea.hbm %s641_s0, 256 }
   0x5   :  { %p487_p0 = scmp.ne.s32.totalorder %s641_s0, %s486_s18  ;;  %p490_p1 = scmp.lt.u32.totalorder %s486_s18, %s641_s0 }
   0x7   :  { %p492_p2 = pnand %p490_p1, %p487_p0 }
   0x9   :  { %495 = shalt.err (!%p492_p2)
}
   0xa   :  { %s496_s23 = scalar_lea.vmem %s18_s13, 256  ;;  %p501_p4 = scmp.lt.s32.totalorder %s18_s13, %s18_s13 }
   0xb   :  { %p497_p3 = scmp.ne.s32.totalorder %s18_s13, %s496_s23  ;;  %p502_p5 = scmp.lt.s32.totalorder %s496_s23, %s496_s23 }
   0xd   :  { %p503_p6 = por %p502_p5, %p501_p4 }
   0xf   :  { %p504_p7 = pnand %p503_p6, %p497_p3 }
  0x11   :  { %507 = shalt.err (!%p504_p7)
}
  0x12   :  { %20 = dma.hbm_to_vmem [thread:$0]  %s641_s0, 256, %s18_s13, [#allocation3]  }
  0x13   :  { %s508_s28 = scalar_lea.hbm %s642_s1, 3456 }
  0x14   :  { %p509_p8 = scmp.ne.s32.totalorder %s642_s1, %s508_s28  ;;  %p512_p9 = scmp.lt.u32.totalorder %s508_s28, %s642_s1 }
  0x16   :  { %p514_p10 = pnand %p512_p9, %p509_p8 }
  0x18   :  { %517 = shalt.err (!%p514_p10)
}
  0x19   :  { %s518_s6 = scalar_lea.vmem %s584_s15, 3456  ;;  %p523_p12 = scmp.lt.s32.totalorder %s584_s15, %s584_s15 }
  0x1a   :  { %p519_p11 = scmp.ne.s32.totalorder %s584_s15, %s518_s6  ;;  %p524_p13 = scmp.lt.s32.totalorder %s518_s6, %s518_s6 }
  0x1c   :  { %p525_p0 = por %p524_p13, %p523_p12 }
  0x1e   :  { %p526_p1 = pnand %p525_p0, %p519_p11 }
  0x20   :  { %529 = shalt.err (!%p526_p1)
}
  0x21   :  { %s560_s0 = smov 64   ;;  %s561_s7 = smov 4  }
  0x22   :  { %32 = dma.hbm_to_vmem [thread:$0]  %s642_s1, 3456, %s584_s15, [#allocation6], %s560_s0, %s560_s0, %s561_s7  }
  0x23   :  { %552 = dma.done.wait [#allocation3], 256  }
  0x24   :  { %553 = vsyncadd [#allocation3], 4294967040 }
  0x25   :  { %554 = dma.done.wait [#allocation6], 3456  }
  0x26   :  { %555 = vsyncadd [#allocation6], 4294963840  ;;  %v562_v0 = vmov 0   ;;  %v451_v1 = vld [vmem:[#allocation5 + $0x80] sm:$0xff]   ;;  %v454_v4 = vld [vmem:[#allocation5 + $0x88] sm:$0xff]   ;;  %vm280_vm0 = vcmask 392192  }
  0x27   :  { %324 = vmatprep.subr.bf16.mxu1 %v562_v0  ;;  %v452_v2 = vld [vmem:[#allocation5 + $0x40] sm:$0xff]   ;;  %v455_v5 = vld [vmem:[#allocation5 + $0x48] sm:$0xff]   ;;  %v457_v7 = vld [vmem:[#allocation5 + $0x90] sm:$0xff]   ;;  %s563_s11 = smov [#allocation7]  }
  0x28   :  { %325 = vmatpush1.bf16.msra.mxu1 %v451_v1  ;;  %v453_v3 = vld [vmem:[#allocation5] sm:$0xff]   ;;  %423 = vmatprep.subr.bf16.mxu0 %v452_v2  ;;  %v456_v6 = vld [vmem:[#allocation5 + $0x8] sm:$0xff]   ;;  %v458_v8 = vld [vmem:[#allocation5 + $0x50] sm:$0xff]   ;;  %s379_s12 = sshll.u32 %s563_s11, 4  ;;  %s380_s12 = int_to_ptr.vmem [resolvable:$true] %s379_s12 }
  0x29   :  { %326 = vmatprep.subr.bf16.mxu1 %v562_v0  ;;  %424 = vmatpush3.bf16.msra.mxu0 %v453_v3  ;;  %v459_v9 = vld [vmem:[#allocation5 + $0x10] sm:$0xff]   ;;  %v460_v10 = vld [vmem:[#allocation5 + $0x98] sm:$0xff]   ;;  %v464_v13 = vld [vmem:[#allocation5 + $0x60] sm:$0xff]   ;;  %s530_s13 = scalar_lea.vmem %s380_s12, 64  ;;  %p535_p3 = scmp.lt.s32.totalorder %s380_s12, %s380_s12 }
  0x2a   :  { %425 = vmatprep.subr.bf16.mxu0 %v455_v5  ;;  %v461_v11 = vld [vmem:[#allocation5 + $0x58] sm:$0xff]   ;;  %v463_v14 = vld [vmem:[#allocation5 + $0xa0] sm:$0xff]   ;;  %v467_v16 = vld [vmem:[#allocation5 + $0x68] sm:$0xff]   ;;  %p531_p2 = scmp.ne.s32.totalorder %s380_s12, %s530_s13  ;;  %p536_p4 = scmp.lt.s32.totalorder %s530_s13, %s530_s13 }
  0x2b   :  { %v462_v12 = vld [vmem:[#allocation5 + $0x18] sm:$0xff]   ;;  %v465_v15 = vld [vmem:[#allocation5 + $0x20] sm:$0xff]   ;;  %v466_v17 = vld [vmem:[#allocation5 + $0xa8] sm:$0xff]  }
  0x2c   :  { %327 = vmatpush1.bf16.msra.mxu1 %v454_v4  ;;  %v468_v18 = vld [vmem:[#allocation5 + $0x28] sm:$0xff]   ;;  %v470_v19 = vld [vmem:[#allocation5 + $0x70] sm:$0xff]   ;;  %v473_v22 = vld [vmem:[#allocation5 + $0x78] sm:$0xff]   ;;  %p537_p5 = por %p536_p4, %p535_p3 }
  0x2d   :  { %328 = vmatprep.subr.bf16.mxu1 %v562_v0  ;;  %426 = vmatpush3.bf16.msra.mxu0 %v456_v6  ;;  %v469_v20 = vld [vmem:[#allocation5 + $0xb0] sm:$0xff]   ;;  %v472_v24 = vld [vmem:[#allocation5 + $0xb8] sm:$0xff]   ;;  %v475_v29 = vld [vmem:[#allocation5 + $0xc0] sm:$0xff]  }
  0x2e   :  { %427 = vmatprep.subr.bf16.mxu0 %v458_v8  ;;  %v471_v21 = vld [vmem:[#allocation5 + $0x30] sm:$0xff]   ;;  %v43_v26 = vld [vmem:[#allocation2 + $0x8] sm:$0xff]  ;;  %v478_v31 = vld [vmem:[#allocation5 + $0xc8] sm:$0xff]   ;;  %p538_p6 = pnand %p537_p5, %p531_p2 }
  0x2f   :  { %v42_v23 = vld [vmem:[#allocation2] sm:$0xff]  ;;  %v474_v27 = vld [vmem:[#allocation5 + $0x38] sm:$0xff]   ;;  %v393_v28 = vcombine.high %v43_v26, %v43_v26  ;;  %v392_v33 = vcombine.low %v43_v26, %v43_v26 }
  0x30   :  { %329 = vmatpush1.bf16.msra.mxu1 %v457_v7  ;;  %v391_v25 = vcombine.high %v42_v23, %v42_v23  ;;  %v390_v30 = vcombine.low %v42_v23, %v42_v23  ;;  %v479_v32 = vld [vmem:[#allocation5 + $0xd0] sm:$0xff]  }
  0x31   :  { %330 = vmatprep.subr.bf16.mxu1 %v562_v0  ;;  %428 = vmatpush3.bf16.msra.mxu0 %v459_v9  ;;  %v389_v39 = vld [vmem:[%s643_s2] ss:$0 sm:$0xff] }
  0x32   :  { %429 = vmatprep.subr.bf16.mxu0 %v461_v11  ;;  %316 = vmatprep.mubr.bf16.mxu0 %v391_v25 }
  0x33   :  { %421 = vmatprep.mubr.msk.bf16.mxu1 %vm280_vm0, %v393_v28 }
  0x34   :  { %331 = vmatpush1.bf16.msra.mxu1 %v460_v10 }
  0x35   :  { %332 = vmatprep.subr.bf16.mxu1 %v562_v0  ;;  %430 = vmatpush3.bf16.msra.mxu0 %v462_v12 }
  0x36   :  { %431 = vmatprep.subr.bf16.mxu0 %v464_v13 }
  0x38   :  { %333 = vmatpush1.bf16.msra.mxu1 %v463_v14 }
  0x39   :  { %334 = vmatprep.subr.bf16.mxu1 %v562_v0  ;;  %432 = vmatpush3.bf16.msra.mxu0 %v465_v15 }
  0x3a   :  { %433 = vmatprep.subr.bf16.mxu0 %v467_v16 }
  0x3c   :  { %335 = vmatpush1.bf16.msra.mxu1 %v466_v17 }
  0x3d   :  { %336 = vmatprep.subr.bf16.mxu1 %v562_v0  ;;  %434 = vmatpush3.bf16.msra.mxu0 %v468_v18 }
  0x3e   :  { %435 = vmatprep.subr.bf16.mxu0 %v470_v19 }
  0x40   :  { %337 = vmatpush1.bf16.msra.mxu1 %v469_v20 }
  0x41   :  { %338 = vmatprep.subr.bf16.mxu1 %v562_v0  ;;  %436 = vmatpush3.bf16.msra.mxu0 %v471_v21 }
  0x42   :  { %437 = vmatprep.subr.bf16.mxu0 %v473_v22 }
  0x44   :  { %339 = vmatpush1.bf16.msra.mxu1 %v472_v24 }
  0x45   :  { %340 = vmatprep.subr.bf16.mxu1 %v562_v0  ;;  %438 = vmatpush3.bf16.msra.mxu0 %v474_v27 }
  0x48   :  { %341 = vmatpush1.bf16.msra.mxu1 %v475_v29  ;;  %317 = vmatmul.mubr.bf16.vlgmr.msra.gmra.mrb[0].mxu0 %v390_v30 }
  0x49   :  { %342 = vmatprep.subr.bf16.mxu1 %v562_v0 }
  0x4c   :  { %343 = vmatpush1.bf16.msra.mxu1 %v478_v31 }
  0x4d   :  { %344 = vmatprep.subr.bf16.mxu1 %v562_v0 }
  0x50   :  { %345 = vmatpush1.bf16.msra.mxu1 %v479_v32 }
  0x53   :  { %357 = vmatmul.mubr.bf16.vlgmr.msra.gmra.mrb[0].mxu1 %v392_v33 }
 0x11b   :  { %v439_v34 = vpop.f32.mrb[0].mxu0 }
 0x11c   :  { %v440_v35 = vpop.f32.mrb[1].mxu0 }
 0x11d   :  { %v441_v36 = vadd.f32 %v440_v35, %v439_v34  ;;  %v442_v37 = vpop.f32.mrb[2].mxu0 }
 0x11e   :  { %v443_v38 = vpop.f32.mrb[3].mxu0 }
 0x11f   :  { %v319_v40 = vadd.f32 %v441_v36, %v389_v39 }
 0x126   :  { %v358_v41 = vpop.f32.mrb[0].mxu1 }
 0x127   :  { %v359_v42 = vadd.f32 %v358_v41, %v319_v40  ;;  %v360_v43 = vpop.f32.mrb[1].mxu1 }
 0x128   :  { %v361_v44 = vpop.f32.mrb[2].mxu1 }
 0x129   :  { %v422_v45 = vmul.f32 -1.442695, %v359_v42  ;;  %v362_v46 = vpop.f32.mrb[3].mxu1 }
 0x12b   :  { %482 = vpow2.f32 %v422_v45 }
 0x135   :  { %v483_v47 = vpop.eup %482 }
 0x136   :  { %v367_v48 = vadd.f32 1.0, %v483_v47 }
 0x138   :  { %484 = vrcp.f32 %v367_v48 }
 0x142   :  { %v485_v49 = vpop.eup %484 }
 0x143   :  { %v370_v50 = vmul.f32 %v485_v49, %v359_v42 }
 0x145   :  { %v371_v51 = vpack.c.bf16 %v370_v50, %v370_v50 }
 0x147   :  { %372 = vst [vmem:[#allocation7] sm:$0xf] %v371_v51 }
 0x148   :  { %541 = shalt.err (!%p538_p6)
}
 0x149   :  { %s542_s15 = scalar_lea.hbm %s644_s3, 64 }
 0x14a   :  { %p543_p7 = scmp.ne.s32.totalorder %s644_s3, %s542_s15  ;;  %p546_p8 = scmp.lt.u32.totalorder %s542_s15, %s644_s3 }
 0x14c   :  { %p548_p9 = pnand %p546_p8, %p543_p7 }
 0x14e   :  { %551 = shalt.err (!%p548_p9)
}
 0x14f   :  { %382 = dma.vmem_to_hbm [thread:$0]  %s380_s12, 64, %s644_s3, [#allocation4]  }
 0x150   :  { %556 = dma.done.wait [#allocation4], 64  }
 0x151   :  { %557 = vsyncadd [#allocation4], 4294967232 }
 0x152   :  { %386 = vsyncpa [#allocation3], 1 }
 0x153   :  { %387 = vsyncpa [#allocation6], 1 }
 0x154   :  { %388 = vsyncpa [#allocation4], 1 }

</bundles_post_ra>
